<compile_context>
chip_gen: v6e
topology: v6e:2x2x1
jax: 0.10.0
libtpu: 0.0.40
codegen_flags: <defaults>
</compile_context>

<pallas_src>
import functools

import jax
import jax.numpy as jnp
from jax import lax
from jax.experimental import pallas as pl
from jax.experimental.pallas import tpu as pltpu


def _pick_row_tile(n, b, cap=256):
    """Largest row tile <= cap dividing n, shrunk so the grid has >= 2 steps."""
    candidates = [t for t in (256, 128, 64, 32, 16, 8) if t <= cap and n % t == 0]
    if not candidates:
        return n                      # awkward n: single full-extent row block
    for want in (8, 2, 1):            # prefer >=8 grid steps, then >=2, then any
        for t in candidates:
            if b * (n // t) >= want:
                return t
    return candidates[-1]


# ----------------------------- Fused MHA kernel -----------------------------
def _mha_kernel(x_ref, kv_ref, wq_ref, wo_ref, o_ref, *, num_head):
    """One (batch, query-row-tile) grid step.

    x_ref  : (tq, C)    query-side activations (batch dim squeezed)
    kv_ref : (T, 2*Dh)  pre-projected, head-summed K/V for this batch, bf16
    wq_ref : (C, C)     to_q weight^T with softmax scale folded in, bf16
    wo_ref : (C, C)     to_o weight^T, bf16
    o_ref  : (tq, C)    output tile
    """
    x = x_ref[...].astype(jnp.bfloat16)                                    # (tq, C)
    kv = kv_ref[...]                                                       # (T, 2Dh) bf16

    # Q projection: bf16 MXU operands, f32 accumulation, single bf16 cast for reuse.
    q = jnp.dot(x, wq_ref[...],
                preferred_element_type=jnp.float32).astype(jnp.bfloat16)   # (tq, C)

    c = q.shape[-1]
    dh = c // num_head
    ksum = kv[:, :dh]                                                      # (T, Dh)
    vsum = kv[:, dh:]                                                      # (T, Dh)

    # Static per-head loop (num_head is small).  Per-head slices come straight out of
    # the lane-dense bf16 q; per-head intermediates are only (tq, T) + (tq, Dh), so
    # vreg pressure stays low now that the f32 output accumulator is gone.
    ys = []
    for h in range(num_head):
        qh = q[:, h * dh:(h + 1) * dh]                                     # (tq, Dh)
        # sim = qh @ ksum^T, contracting last dims directly (no transpose);
        # the softmax scale is already folded into Wq.
        sim = lax.dot_general(qh, ksum, (((1,), (1,)), ((), ())),
                              preferred_element_type=jnp.float32)          # (tq, T)
        sim = sim - jnp.max(sim, axis=-1, keepdims=True)
        e = jnp.exp(sim)
        # TODO(synk): switch to an exact reciprocal if this kernel is reused for training.
        att = e * pl.reciprocal(jnp.sum(e, axis=-1, keepdims=True), approx=True)
        ys.append(jnp.dot(att.astype(jnp.bfloat16), vsum,
                          preferred_element_type=jnp.float32)
                  .astype(jnp.bfloat16))                                   # (tq, Dh)

    # One lane-dense output projection: (tq, C) @ (C, C), K=C contraction.
    y_cat = jnp.concatenate(ys, axis=-1)                                   # (tq, C) bf16
    out = jnp.dot(y_cat, wo_ref[...], preferred_element_type=jnp.float32)  # (tq, C) f32
    o_ref[...] = out.astype(o_ref.dtype)


# ----------------------------- Wrapper -----------------------------
def multi_head_attention(input_, context, params, num_head):
    """Forward of MultiHeadAttention. input_: (b, ..., c); context: (b, ..., c) or None."""
    if context is None:
        context = input_

    orig_shape = input_.shape
    b, c = orig_shape[0], orig_shape[-1]
    n = 1
    for s in orig_shape[1:-1]:
        n *= s
    x = input_.reshape(b, n, c)
    ctx = context.reshape(b, -1, c)      # flatten any spatial dims (robust self-attn)
    t = ctx.shape[1]
    dh = c // num_head
    scale = float(dh) ** -0.5

    # Weight preprocessing (once per call; in practice cache these):
    #  * transpose so the kernel computes x @ W^T with no in-kernel transpose,
    #  * fold the softmax scale into Wq,
    #  * fold the reference's k/v head-sum into the to_kv weight,
    #  * cast to bf16 for the MXU (accumulation stays f32).
    wq_t = (params["Wq"].T * scale).astype(jnp.bfloat16)                     # (c, c)
    wkv = params["Wkv"]                                                      # (2c, c)
    wk_sum = wkv[:c].reshape(num_head, dh, c).sum(axis=0)                    # (dh, c)
    wv_sum = wkv[c:].reshape(num_head, dh, c).sum(axis=0)                    # (dh, c)
    wkv_t = jnp.concatenate([wk_sum, wv_sum], axis=0).T.astype(jnp.bfloat16)  # (c, 2dh)
    wo_t = params["Wo"].T.astype(jnp.bfloat16)                               # (c, c)

    # KV pre-projection: computed once per batch element (XLA), not per query tile.
    kv = jnp.einsum("btc,cd->btd", ctx.astype(jnp.bfloat16), wkv_t,
                    preferred_element_type=jnp.float32).astype(jnp.bfloat16)  # (b,t,2dh)

    tq = _pick_row_tile(n, b)
    grid = (b, n // tq)

    out = pl.pallas_call(
        functools.partial(_mha_kernel, num_head=num_head),
        out_shape=jax.ShapeDtypeStruct((b, n, c), input_.dtype),
        grid_spec=pltpu.PrefetchScalarGridSpec(
            num_scalar_prefetch=0,
            grid=grid,
            in_specs=[
                # query tile (batch dim squeezed away)
                pl.BlockSpec((pl.Squeezed(), tq, c), lambda bi, qi: (bi, qi, 0)),
                # pre-projected kv for this batch element (bf16, tiny)
                pl.BlockSpec((pl.Squeezed(), t, 2 * dh), lambda bi, qi: (bi, 0, 0)),
                # resident weights: constant index_map -> single-buffered
                pl.BlockSpec((c, c), lambda bi, qi: (0, 0),
                             pipeline_mode=pl.Buffered(1)),   # Wq^T * scale
                pl.BlockSpec((c, c), lambda bi, qi: (0, 0),
                             pipeline_mode=pl.Buffered(1)),   # Wo^T
            ],
            out_specs=pl.BlockSpec((pl.Squeezed(), tq, c),
                                   lambda bi, qi: (bi, qi, 0)),
        ),
        compiler_params=pltpu.CompilerParams(
            dimension_semantics=("parallel", "parallel"),
            vmem_limit_bytes=32 * 1024 * 1024),
    )(x, kv, wq_t, wo_t)

    return out.reshape(orig_shape)


# ----------------------------- Pure-JAX f32 reference -----------------------------
def reference_forward(input_, context, params, num_head):
    """Mirrors the PyTorch MultiHeadAttention.forward non-flash path, in f32."""
    if context is None:
        context = input_
    c = input_.shape[-1]
    h = num_head
    d = c // h
    scale = float(d) ** -0.5

    q = input_ @ params["Wq"].T
    kv = context @ params["Wkv"].T
    k, v = jnp.split(kv, 2, axis=-1)

    def split_heads(a):                      # 'b ... (h d) -> b h ... d'
        a = a.reshape(a.shape[:-1] + (h, d))
        return jnp.moveaxis(a, -2, 1)

    q, k, v = map(split_heads, (q, k, v))
    # 'b ... n d, b h t d -> b ... n t' : k's head axis ('g' here) is summed out.
    sim = jnp.einsum('bh...d,bgtd->bh...t', q, k) * scale
    att = jax.nn.softmax(sim, axis=-1)
    y = jnp.einsum('bh...t,bgtd->bh...d', att, v)
    y = jnp.moveaxis(y, 1, -2)               # 'b h ... d -> b ... h d'
    y = y.reshape(y.shape[:-2] + (c,))       # '... h d -> ... (h d)'
    return y @ params["Wo"].T


# ----------------------------- Main -----------------------------
if __name__ == "__main__":
    # batch=2, query seq=16, context seq=8, hidden=128 (lane-dense), heads=4 (Dh=32)
    B, N, T, C, H = 2, 16, 8, 128, 4
    key = jax.random.PRNGKey(0)
    kx, kc, k1, k2, k3 = jax.random.split(key, 5)
    x = jax.random.normal(kx, (B, N, C), jnp.float32)
    ctx = jax.random.normal(kc, (B, T, C), jnp.float32)
    params = dict(
        Wq=0.05 * jax.random.normal(k1, (C, C), jnp.float32),
        Wkv=0.05 * jax.random.normal(k2, (2 * C, C), jnp.float32),
        Wo=0.05 * jax.random.normal(k3, (C, C), jnp.float32),
    )

    # Kernel uses bf16 MXU operands (f32 accumulation); compare against the f32
    # reference with a bf16-appropriate tolerance.
    def check(out, ref, name):
        err = float(jnp.max(jnp.abs(out - ref)))
        tol = 4e-2 * float(jnp.max(jnp.abs(ref))) + 1.5e-2
        if err > tol:
            raise AssertionError(f"{name}: mismatch vs reference: max abs err {err} (tol {tol})")

    # Cross-attention
    out = multi_head_attention(x, ctx, params, num_head=H)
    out = jax.block_until_ready(out)
    assert out.shape == x.shape
    check(out, reference_forward(x, ctx, params, num_head=H), "cross-attn")

    # Self-attention (context=None)
    out_sa = multi_head_attention(x, None, params, num_head=H)
    out_sa = jax.block_until_ready(out_sa)
    assert out_sa.shape == x.shape
    check(out_sa, reference_forward(x, None, params, num_head=H), "self-attn")

    print("KERNEL_OK")
</pallas_src>

<mosaic_0001>
module attributes {stable_mosaic.version = 11 : i64} {
  func.func @_mha_kernel(%arg0: i32, %arg1: i32, %arg2: memref<1x16x128xf32, #tpu.memory_space<vmem>>, %arg3: memref<1x8x64xbf16, #tpu.memory_space<vmem>>, %arg4: memref<128x128xbf16, #tpu.memory_space<vmem>>, %arg5: memref<128x128xbf16, #tpu.memory_space<vmem>>, %arg6: memref<1x16x128xf32, #tpu.memory_space<vmem>>) attributes {dimension_semantics = [#tpu.dimension_semantics<parallel>, #tpu.dimension_semantics<parallel>], iteration_bounds = array<i64: 2, 1>, scalar_prefetch = 0 : i64, scratch_operands = 0 : i64, tpu.core_type = #tpu.core_type<tc>, window_params = [{transform_indices = @transform_0, window_bounds = array<i64: 1, 16, 128>}, {transform_indices = @transform_1, window_bounds = array<i64: 1, 8, 64>}, {pipeline_mode = #tpu.pipeline_mode<synchronous>, transform_indices = @transform_2, window_bounds = array<i64: 128, 128>}, {pipeline_mode = #tpu.pipeline_mode<synchronous>, transform_indices = @transform_3, window_bounds = array<i64: 128, 128>}, {transform_indices = @transform_4, window_bounds = array<i64: 1, 16, 128>}]} {
    %c0 = arith.constant 0 : index
    %c0_0 = arith.constant 0 : index
    %c0_1 = arith.constant 0 : index
    %0 = vector.load %arg2[%c0, %c0_0, %c0_1] : memref<1x16x128xf32, #tpu.memory_space<vmem>>, vector<1x16x128xf32>
    %1 = vector.shape_cast %0 : vector<1x16x128xf32> to vector<16x128xf32>
    %2 = arith.truncf %1 : vector<16x128xf32> to vector<16x128xbf16>
    %c0_2 = arith.constant 0 : index
    %c0_3 = arith.constant 0 : index
    %c0_4 = arith.constant 0 : index
    %3 = vector.load %arg3[%c0_2, %c0_3, %c0_4] : memref<1x8x64xbf16, #tpu.memory_space<vmem>>, vector<1x8x64xbf16>
    %4 = vector.shape_cast %3 : vector<1x8x64xbf16> to vector<8x64xbf16>
    %c0_5 = arith.constant 0 : index
    %c0_6 = arith.constant 0 : index
    %5 = vector.load %arg4[%c0_5, %c0_6] : memref<128x128xbf16, #tpu.memory_space<vmem>>, vector<128x128xbf16>
    %cst = arith.constant dense<0.000000e+00> : vector<16x128xf32>
    %6 = tpu.matmul %2, %5, %cst {dimension_numbers = #tpu.dot_dimension_numbers<[1], [0], [0], [1], [0, 0, 1, 1], [], []>} : vector<16x128xbf16>, vector<128x128xbf16>, vector<16x128xf32> -> vector<16x128xf32>
    %7 = arith.truncf %6 : vector<16x128xf32> to vector<16x128xbf16>
    %8 = vector.extract_strided_slice %4 {offsets = [0, 0], sizes = [8, 32], strides = [1, 1]} : vector<8x64xbf16> to vector<8x32xbf16>
    %9 = vector.extract_strided_slice %4 {offsets = [0, 32], sizes = [8, 32], strides = [1, 1]} : vector<8x64xbf16> to vector<8x32xbf16>
    %10 = vector.extract_strided_slice %7 {offsets = [0, 0], sizes = [16, 32], strides = [1, 1]} : vector<16x128xbf16> to vector<16x32xbf16>
    %cst_7 = arith.constant dense<0.000000e+00> : vector<16x8xf32>
    %11 = tpu.matmul %10, %8, %cst_7 {dimension_numbers = #tpu.dot_dimension_numbers<[1], [1], [0], [0], [0, 0, 1, 0], [], []>} : vector<16x32xbf16>, vector<8x32xbf16>, vector<16x8xf32> -> vector<16x8xf32>
    %cst_8 = arith.constant dense<0xFF800000> : vector<16xf32>
    %12 = vector.multi_reduction <maximumf>, %11, %cst_8 [1] : vector<16x8xf32> to vector<16xf32>
    %13 = vector.shape_cast %12 : vector<16xf32> to vector<16x1xf32>
    %14 = vector.broadcast %13 : vector<16x1xf32> to vector<16x8xf32>
    %15 = arith.subf %11, %14 : vector<16x8xf32>
    %16 = math.exp %15 : vector<16x8xf32>
    %cst_9 = arith.constant dense<0.000000e+00> : vector<16xf32>
    %17 = vector.multi_reduction <add>, %16, %cst_9 [1] : vector<16x8xf32> to vector<16xf32>
    %18 = vector.shape_cast %17 : vector<16xf32> to vector<16x1xf32>
    %19 = tpu.reciprocal %18 {approx = true} : vector<16x1xf32> -> vector<16x1xf32>
    %20 = vector.broadcast %19 : vector<16x1xf32> to vector<16x8xf32>
    %21 = arith.mulf %16, %20 : vector<16x8xf32>
    %22 = arith.truncf %21 : vector<16x8xf32> to vector<16x8xbf16>
    %cst_10 = arith.constant dense<0.000000e+00> : vector<16x32xf32>
    %23 = tpu.matmul %22, %9, %cst_10 {dimension_numbers = #tpu.dot_dimension_numbers<[1], [0], [0], [1], [0, 0, 1, 1], [], []>} : vector<16x8xbf16>, vector<8x32xbf16>, vector<16x32xf32> -> vector<16x32xf32>
    %24 = arith.truncf %23 : vector<16x32xf32> to vector<16x32xbf16>
    %25 = vector.extract_strided_slice %7 {offsets = [0, 32], sizes = [16, 32], strides = [1, 1]} : vector<16x128xbf16> to vector<16x32xbf16>
    %cst_11 = arith.constant dense<0.000000e+00> : vector<16x8xf32>
    %26 = tpu.matmul %25, %8, %cst_11 {dimension_numbers = #tpu.dot_dimension_numbers<[1], [1], [0], [0], [0, 0, 1, 0], [], []>} : vector<16x32xbf16>, vector<8x32xbf16>, vector<16x8xf32> -> vector<16x8xf32>
    %cst_12 = arith.constant dense<0xFF800000> : vector<16xf32>
    %27 = vector.multi_reduction <maximumf>, %26, %cst_12 [1] : vector<16x8xf32> to vector<16xf32>
    %28 = vector.shape_cast %27 : vector<16xf32> to vector<16x1xf32>
    %29 = vector.broadcast %28 : vector<16x1xf32> to vector<16x8xf32>
    %30 = arith.subf %26, %29 : vector<16x8xf32>
    %31 = math.exp %30 : vector<16x8xf32>
    %cst_13 = arith.constant dense<0.000000e+00> : vector<16xf32>
    %32 = vector.multi_reduction <add>, %31, %cst_13 [1] : vector<16x8xf32> to vector<16xf32>
    %33 = vector.shape_cast %32 : vector<16xf32> to vector<16x1xf32>
    %34 = tpu.reciprocal %33 {approx = true} : vector<16x1xf32> -> vector<16x1xf32>
    %35 = vector.broadcast %34 : vector<16x1xf32> to vector<16x8xf32>
    %36 = arith.mulf %31, %35 : vector<16x8xf32>
    %37 = arith.truncf %36 : vector<16x8xf32> to vector<16x8xbf16>
    %cst_14 = arith.constant dense<0.000000e+00> : vector<16x32xf32>
    %38 = tpu.matmul %37, %9, %cst_14 {dimension_numbers = #tpu.dot_dimension_numbers<[1], [0], [0], [1], [0, 0, 1, 1], [], []>} : vector<16x8xbf16>, vector<8x32xbf16>, vector<16x32xf32> -> vector<16x32xf32>
    %39 = arith.truncf %38 : vector<16x32xf32> to vector<16x32xbf16>
    %40 = vector.extract_strided_slice %7 {offsets = [0, 64], sizes = [16, 32], strides = [1, 1]} : vector<16x128xbf16> to vector<16x32xbf16>
    %cst_15 = arith.constant dense<0.000000e+00> : vector<16x8xf32>
    %41 = tpu.matmul %40, %8, %cst_15 {dimension_numbers = #tpu.dot_dimension_numbers<[1], [1], [0], [0], [0, 0, 1, 0], [], []>} : vector<16x32xbf16>, vector<8x32xbf16>, vector<16x8xf32> -> vector<16x8xf32>
    %cst_16 = arith.constant dense<0xFF800000> : vector<16xf32>
    %42 = vector.multi_reduction <maximumf>, %41, %cst_16 [1] : vector<16x8xf32> to vector<16xf32>
    %43 = vector.shape_cast %42 : vector<16xf32> to vector<16x1xf32>
    %44 = vector.broadcast %43 : vector<16x1xf32> to vector<16x8xf32>
    %45 = arith.subf %41, %44 : vector<16x8xf32>
    %46 = math.exp %45 : vector<16x8xf32>
    %cst_17 = arith.constant dense<0.000000e+00> : vector<16xf32>
    %47 = vector.multi_reduction <add>, %46, %cst_17 [1] : vector<16x8xf32> to vector<16xf32>
    %48 = vector.shape_cast %47 : vector<16xf32> to vector<16x1xf32>
    %49 = tpu.reciprocal %48 {approx = true} : vector<16x1xf32> -> vector<16x1xf32>
    %50 = vector.broadcast %49 : vector<16x1xf32> to vector<16x8xf32>
    %51 = arith.mulf %46, %50 : vector<16x8xf32>
    %52 = arith.truncf %51 : vector<16x8xf32> to vector<16x8xbf16>
    %cst_18 = arith.constant dense<0.000000e+00> : vector<16x32xf32>
    %53 = tpu.matmul %52, %9, %cst_18 {dimension_numbers = #tpu.dot_dimension_numbers<[1], [0], [0], [1], [0, 0, 1, 1], [], []>} : vector<16x8xbf16>, vector<8x32xbf16>, vector<16x32xf32> -> vector<16x32xf32>
    %54 = arith.truncf %53 : vector<16x32xf32> to vector<16x32xbf16>
    %55 = vector.extract_strided_slice %7 {offsets = [0, 96], sizes = [16, 32], strides = [1, 1]} : vector<16x128xbf16> to vector<16x32xbf16>
    %cst_19 = arith.constant dense<0.000000e+00> : vector<16x8xf32>
    %56 = tpu.matmul %55, %8, %cst_19 {dimension_numbers = #tpu.dot_dimension_numbers<[1], [1], [0], [0], [0, 0, 1, 0], [], []>} : vector<16x32xbf16>, vector<8x32xbf16>, vector<16x8xf32> -> vector<16x8xf32>
    %cst_20 = arith.constant dense<0xFF800000> : vector<16xf32>
    %57 = vector.multi_reduction <maximumf>, %56, %cst_20 [1] : vector<16x8xf32> to vector<16xf32>
    %58 = vector.shape_cast %57 : vector<16xf32> to vector<16x1xf32>
    %59 = vector.broadcast %58 : vector<16x1xf32> to vector<16x8xf32>
    %60 = arith.subf %56, %59 : vector<16x8xf32>
    %61 = math.exp %60 : vector<16x8xf32>
    %cst_21 = arith.constant dense<0.000000e+00> : vector<16xf32>
    %62 = vector.multi_reduction <add>, %61, %cst_21 [1] : vector<16x8xf32> to vector<16xf32>
    %63 = vector.shape_cast %62 : vector<16xf32> to vector<16x1xf32>
    %64 = tpu.reciprocal %63 {approx = true} : vector<16x1xf32> -> vector<16x1xf32>
    %65 = vector.broadcast %64 : vector<16x1xf32> to vector<16x8xf32>
    %66 = arith.mulf %61, %65 : vector<16x8xf32>
    %67 = arith.truncf %66 : vector<16x8xf32> to vector<16x8xbf16>
    %cst_22 = arith.constant dense<0.000000e+00> : vector<16x32xf32>
    %68 = tpu.matmul %67, %9, %cst_22 {dimension_numbers = #tpu.dot_dimension_numbers<[1], [0], [0], [1], [0, 0, 1, 1], [], []>} : vector<16x8xbf16>, vector<8x32xbf16>, vector<16x32xf32> -> vector<16x32xf32>
    %69 = arith.truncf %68 : vector<16x32xf32> to vector<16x32xbf16>
    %70 = tpu.concatenate %24, %39, %54, %69 in 1 : vector<16x32xbf16>, vector<16x32xbf16>, vector<16x32xbf16>, vector<16x32xbf16> -> vector<16x128xbf16>
    %c0_23 = arith.constant 0 : index
    %c0_24 = arith.constant 0 : index
    %71 = vector.load %arg5[%c0_23, %c0_24] : memref<128x128xbf16, #tpu.memory_space<vmem>>, vector<128x128xbf16>
    %cst_25 = arith.constant dense<0.000000e+00> : vector<16x128xf32>
    %72 = tpu.matmul %70, %71, %cst_25 {dimension_numbers = #tpu.dot_dimension_numbers<[1], [0], [0], [1], [0, 0, 1, 1], [], []>} : vector<16x128xbf16>, vector<128x128xbf16>, vector<16x128xf32> -> vector<16x128xf32>
    %c0_26 = arith.constant 0 : index
    %c0_27 = arith.constant 0 : index
    %c0_28 = arith.constant 0 : index
    %73 = vector.load %arg6[%c0_26, %c0_27, %c0_28] : memref<1x16x128xf32, #tpu.memory_space<vmem>>, vector<1x16x128xf32>
    %74 = vector.shape_cast %73 : vector<1x16x128xf32> to vector<16x128xf32>
    %75 = vector.shape_cast %72 : vector<16x128xf32> to vector<1x16x128xf32>
    tpu.vector_store %arg6[%c0_26, %c0_27, %c0_28], %75 {strides = array<i32>} : memref<1x16x128xf32, #tpu.memory_space<vmem>>, vector<1x16x128xf32>,
    return
  }
  func.func @transform_0(%arg0: i32, %arg1: i32) -> (i32, i32, i32) {
    %c0_i32 = arith.constant 0 : i32
    %c0_i32_0 = arith.constant 0 : i32
    return %arg0, %arg1, %c0_i32 : i32, i32, i32
  }
  func.func @transform_1(%arg0: i32, %arg1: i32) -> (i32, i32, i32) {
    %c0_i32 = arith.constant 0 : i32
    %c0_i32_0 = arith.constant 0 : i32
    %c0_i32_1 = arith.constant 0 : i32
    return %arg0, %c0_i32, %c0_i32_0 : i32, i32, i32
  }
  func.func @transform_2(%arg0: i32, %arg1: i32) -> (i32, i32) {
    %c0_i32 = arith.constant 0 : i32
    %c0_i32_0 = arith.constant 0 : i32
    %c0_i32_1 = arith.constant 0 : i32
    return %c0_i32, %c0_i32_0 : i32, i32
  }
  func.func @transform_3(%arg0: i32, %arg1: i32) -> (i32, i32) {
    %c0_i32 = arith.constant 0 : i32
    %c0_i32_0 = arith.constant 0 : i32
    %c0_i32_1 = arith.constant 0 : i32
    return %c0_i32, %c0_i32_0 : i32, i32
  }
  func.func @transform_4(%arg0: i32, %arg1: i32) -> (i32, i32, i32) {
    %c0_i32 = arith.constant 0 : i32
    %c0_i32_0 = arith.constant 0 : i32
    return %arg0, %arg1, %c0_i32 : i32, i32, i32
  }
}

</mosaic_0001>

<bundles_post_ra>
// kernel: tpu_custom_call.1
= control target key start
LH: loop header
LB: loop body
LE: loop exit
PB: predicated region body
PF: predicated region fallthrough
CT: control target
= control target key end

     0   :  { %s2051_s0 = inlined_call_operand.hbm [shape: f32[2,16,128], index: 0, kind: input, shape index: {}]   ;;  %s2052_s1 = inlined_call_operand.hbm [shape: bf16[2,8,64], index: 1, kind: input, shape index: {}]   ;;  %s2053_s2 = inlined_call_operand.hbm [shape: bf16[128,128], index: 2, kind: input, shape index: {}]   ;;  %s2054_s3 = inlined_call_operand.hbm [shape: bf16[128,128], index: 3, kind: input, shape index: {}]   ;;  %s2055_s4 = inlined_call_operand.hbm [shape: f32[2,16,128], index: 4, kind: output, shape index: {}]  }
   0x1   :  { %2059 = sst [smem:[#allocation19_spill]] %s2051_s0 }
   0x2   :  { %2060 = sst [smem:[#allocation20_spill]] %s2053_s2 }
   0x3   :  { %2061 = sst [smem:[#allocation21_spill]] %s2054_s3 }
   0x4   :  { %9 = vsyncpa [#allocation3], 0 }
   0x5   :  { %11 = vsyncpa [#allocation3 + $0x1], 0 }
   0x6   :  { %12 = vsyncpa [#allocation6], 0 }
   0x7   :  { %14 = vsyncpa [#allocation6 + $0x1], 0 }
   0x8   :  { %15 = vsyncpa [#allocation9], 0 }
   0x9   :  { %16 = vsyncpa [#allocation4], 0 }
   0xa   :  { %18 = vsyncpa [#allocation4 + $0x1], 0  ;;  %s1715_s15 = smov 0   ;;  %s1717_s16 = smov 0  }
   0xb   :  { %s1719_s17 = smov 0   ;;  %s1721_s18 = smov 0  }
   0xc   :  { %s1723_s19 = smov 0   ;;  %s1725_s20 = smov 0  }
   0xd LB: > { %2062 = sst [smem:[#allocation16_spill]] %s1660_s17  ;;  %s1746_s21 = sadd.s32 4294967295, %s1672_s20   ;;  %s1672_s20 = sphi %s1725_s20, %s24_s20   ;;  %s1668_s19 = sphi %s1723_s19, %s2087_s19   ;;  %s1664_s18 = sphi %s1721_s18, %s2086_s18   ;;  %s1660_s17 = sphi %s1719_s17, %s2082_s17   ;;  %s1656_s16 = sphi %s1717_s16, %s2085_s16   ;;  %s1652_s15 = sphi %s1715_s15, %s2084_s15  }
   0xe   : > { %s1154_s22 = sadd.s32 4294967294, %s1672_s20   ;;  %p58_p0 = scmp.ne.s32.totalorder %s1656_s16, %s1652_s15 }
   0xf   : > { %p2056_p1 = scmp.eq.s32.totalorder %s1746_s21, 0  ;;  %p158_p3 = scmp.eq.s32.totalorder %s1154_s22, 1 }
  0x10   : > { %p1155_p5 = scmp.ge.s32.totalorder %s1672_s20, 1  ;;  %p165_p7 = scmp.lt.s32.totalorder %s1672_s20, 3 }
  0x11   : > { %p1755_p4 = por %p2056_p1, %p58_p0  ;;  %p1760_p6 = por %p158_p3, %p58_p0 }
  0x12   : > { %p1765_p8 = pnand %p1155_p5, %p165_p7  ;;  %s1674_s26 = smov [#allocation7]  }
  0x13   : > { %s2064_s24 = scalar_select %p1760_p6, 1, 0 }
  0x14   : > { %s177_s27 = sshll.u32 %s1674_s26, 4  ;;  %p1338_p9 = pneg %p1765_p8  ;;  %s178_s27 = int_to_ptr.vmem [resolvable:$true] %s177_s27 }
  0x15   : > { %s1675_s29 = smov [#allocation8]   ;;  %s1483_s5 = scalar_lea.vmem %s178_s27, 1024 }
  0x16   : > { %p1774_p11 = pnand %p1338_p9, %p2056_p1  ;;  %s190_s30 = sshll.u32 %s1675_s29, 4  ;;  %s191_s30 = int_to_ptr.vmem [resolvable:$true] %s190_s30 }
  0x17   : > { %p1484_p13 = scmp.ne.s32.totalorder %s178_s27, %s1483_s5  ;;  %p1491_p5 = scmp.lt.s32.totalorder %s178_s27, %s178_s27 }
  0x18   : > { %p1474_p12 = pneg %p1774_p11  ;;  %p1492_p7 = scmp.lt.s32.totalorder %s1483_s5, %s1483_s5 }
  0x1a   : > { %p1486_p0 = pnand %p1484_p13, %p1474_p12  ;;  %p1493_p10 = por %p1492_p7, %p1491_p5 }
  0x1c   : > { %p1487_p3 = pneg %p1486_p0 }
  0x1e   : > { %p1494_p9 = pnand %p1493_p10, %p1487_p3 }
  0x20   : > { %1497 = shalt.err (!%p1494_p9)
}
  0x21   : > { %s1676_s6 = smov 64   ;;  %s1677_s7 = smov 4  }
  0x22   : > { %s2067_s2 = sld [smem:[#allocation20_spill]]  ;;  %s1509_s10 = scalar_lea.vmem %s191_s30, 1024 }
  0x23   : > { %p1510_p1 = scmp.ne.s32.totalorder %s191_s30, %s1509_s10  ;;  %p1517_p2 = scmp.lt.s32.totalorder %s191_s30, %s191_s30 }
  0x24   : > { %p1518_p6 = scmp.lt.s32.totalorder %s1509_s10, %s1509_s10 }
  0x25   : > { %p1512_p13 = pnand %p1510_p1, %p1474_p12 }
  0x26   : > { %p1519_p5 = por %p1518_p6, %p1517_p2 }
  0x27   : > { %p1513_p0 = pneg %p1512_p13 }
  0x28   : > { %1341 = dma.hbm_to_vmem [thread:$0]  (!%p1774_p11), %s2067_s2, 1024, %s178_s27, [#allocation6], %s1676_s6, %s1676_s6, %s1677_s7  }
  0x29   : > { %p1520_p10 = pnand %p1519_p5, %p1513_p0 }
  0x2b   : > { %1523 = shalt.err (!%p1520_p10)
}
  0x2c   : > { %s2068_s3 = sld [smem:[#allocation21_spill]]  ;;  %s36_s13 = sadd.s32 1, %s1668_s19 }
  0x2d   : > { %s45_s14 = sadd.s32 1, %s1660_s17  ;;  %p38_p1 = scmp.ge.s32.totalorder %s36_s13, 2 }
  0x2e   : > { %p52_p2 = scmp.ne.s32.totalorder %s1660_s17, %s1656_s16  ;;  %p53_p6 = scmp.eq.s32.totalorder %s1672_s20, 0 }
  0x2f   : > { %p1358_p12 = scmp.lt.s32.totalorder %s1672_s20, 2  ;;  %s2089_s13 = smov (%p38_p1, %s36_s13), 0 }
  0x30   : > { %2069 = sst [smem:[#allocation17_spill]] %s2089_s13  ;;  %p54_p3 = por %p53_p6, %p52_p2 }
  0x31   : > { %p2070_p7 = scmp.eq.s32.totalorder %s1746_s21, 1  ;;  %s40_s26 = ssub.s32 %s1668_s19, %s2089_s13 }
  0x32   : > { %1344 = dma.hbm_to_vmem [thread:$0]  (!%p1774_p11), %s2068_s3, 1024, %s191_s30, [#allocation9], %s1676_s6, %s1676_s6, %s1677_s7  }
  0x33   : > { %p1806_p9 = por %p2070_p7, %p52_p2  ;;  %s1813_s27 = sand.u32 1, %s1660_s17  }
  0x34   : > { %p43_p11 = scmp.eq.s32.totalorder %s40_s26, 0  ;;  %s1159_s28 = sshll.u32 %s1813_s27, 4 }
  0x35   : > { %s1200_s29 = sshll.u32 %s1668_s19, 8  ;;  %s2073_s0 = sld [smem:[#allocation19_spill]] }
  0x36   : > { %s1818_s30 = scalar_select %p43_p11, %s1660_s17, %s45_s14  }
  0x37   : > { %s208_s8 = scalar_lea.vmem [#allocation2], %s1159_s28  ;;  %p1825_p13 = pnand %p1358_p12, %p54_p3 }
  0x38   : > { %2072 = sst [smem:[#allocation18_spill]] %s1818_s30  ;;  %s217_s9 = sshll.u32 %s208_s8, 4  ;;  %s218_s9 = int_to_ptr.vmem [resolvable:$true] %s217_s9 }
  0x39   : > { %s205_s11 = scalar_lea.sflag [#allocation3], %s1813_s27  ;;  %p1526_p0 = pneg %p1825_p13 }
  0x3a   : > { %s1537_s12 = scalar_lea.vmem %s218_s9, 256  ;;  %s1678_s14 = smov [#allocation2]  }
  0x3b   : > { %s216_s7 = scalar_lea.hbm %s2073_s0, %s1200_s29  ;;  %p1538_p5 = scmp.ne.s32.totalorder %s218_s9, %s1537_s12 }
  0x3c   : > { %s1542_s26 = sshll.u32 %s1678_s14, 4  ;;  %s1543_s26 = int_to_ptr.vmem [resolvable:$false] %s1542_s26 }
  0x3d   : > { %p1540_p10 = pnand %p1538_p5, %p1526_p0  ;;  %s1544_s28 = scalar_lea.vmem %s1543_s26, 512 }
  0x3e   : > { %p1545_p2 = scmp.lt.s32.totalorder %s218_s9, %s1543_s26  ;;  %p1546_p6 = scmp.lt.s32.totalorder %s1544_s28, %s1537_s12 }
  0x3f   : > { %p1541_p1 = pneg %p1540_p10 }
  0x40   : > { %p1547_p12 = por %p1546_p6, %p1545_p2 }
  0x42   : > { %p1548_p3 = pnand %p1547_p12, %p1541_p1 }
  0x44   : > { %1551 = shalt.err (!%p1548_p3)
}
  0x45   : > { %s1679_s29 = smov 128   ;;  %s1680_s5 = smov 8  }
  0x46   : > { %1348 = dma.hbm_to_vmem [thread:$0]  (!%p1825_p13), %s216_s7, 256, %s218_s9, %s205_s11, %s1679_s29, %s1679_s29, %s1680_s5  }
  0x47   : > { %s227_s6 = sand.u32 1, %s1672_s20   ;;  %s1162_s8 = sshll.u32 %s1813_s27, 2 }
  0x48   : > { %s1163_s0 = sshll.u32 %s1668_s19, 6  ;;  %s231_s14 = scalar_lea.vmem [#allocation5], %s1162_s8 }
  0x49   : > { %s238_s2 = sshll.u32 %s231_s14, 4  ;;  %s236_s12 = scalar_lea.hbm %s2052_s1, %s1163_s0  ;;  %s239_s2 = int_to_ptr.vmem [resolvable:$true] %s238_s2 }
  0x4a   : > { %s228_s28 = scalar_lea.sflag [#allocation6], %s227_s6  ;;  %s1565_s13 = scalar_lea.vmem %s239_s2, 64 }
  0x4b   : > { %p1566_p7 = scmp.ne.s32.totalorder %s239_s2, %s1565_s13  ;;  %s1681_s30 = smov [#allocation5]  }
  0x4c   : > { %s1570_s17 = sshll.u32 %s1681_s30, 4  ;;  %s1571_s17 = int_to_ptr.vmem [resolvable:$false] %s1570_s17 }
  0x4d   : > { %p1568_p11 = pnand %p1566_p7, %p1526_p0  ;;  %s1572_s7 = scalar_lea.vmem %s1571_s17, 128 }
  0x4e   : > { %p1573_p10 = scmp.lt.s32.totalorder %s239_s2, %s1571_s17  ;;  %p1574_p1 = scmp.lt.s32.totalorder %s1572_s7, %s1565_s13 }
  0x4f   : > { %p1569_p5 = pneg %p1568_p11 }
  0x50   : > { %p1575_p2 = por %p1574_p1, %p1573_p10 }
  0x52   : > { %p1576_p6 = pnand %p1575_p2, %p1569_p5 }
  0x54   : > { %1579 = shalt.err (!%p1576_p6)
}
  0x55   : > { %1351 = dma.hbm_to_vmem [thread:$0]  (!%p1825_p13), %s236_s12, 64, %s239_s2, %s228_s28  }
  0x56   : > { %247 = sbr.rel (%p1765_p8) target bundleno = 2929 (0xb71), region = 36  ;;  %s1851_s0 = sand.u32 (!%p1765_p8), 1, %s1656_s16  }
  0x57   : > { %s1165_s3 = sshll.u32 (!%p1765_p8), %s1851_s0, 4  ;;  %s250_s27 = scalar_lea.sflag (!%p1765_p8), [#allocation3], %s1851_s0 }
  0x58   : > { %s1857_s17 = scalar_lea.vmem (!%p1765_p8), [#allocation2], %s1165_s3 }
  0x5b   : > { %1631 = dma.done.wait (%p1755_p4), %s250_s27, 256  }
  0x5c   : > { %1633 = vsyncadd (%p1755_p4), %s250_s27, 4294967040  ;;  %s258_s2 = sand.u32 1, %s1746_s21   ;;  %s1166_s25 = sshll.u32 %s1851_s0, 2 }
  0x5d   : > { %s259_s13 = scalar_lea.sflag [#allocation6], %s258_s2  ;;  %s1865_s30 = scalar_lea.vmem [#allocation5], %s1166_s25 }
  0x5e   : > { %1635 = dma.done.wait (%p1755_p4), %s259_s13, 64  }
  0x5f   : > { %1637 = vsyncadd (%p1755_p4), %s259_s13, 4294967232  ;;  %p2075_p8 = scmp.eq.s32.totalorder %s1746_s21, 0 }
  0x61   : > { %1639 = dma.done.wait (%p2075_p8), [#allocation6], 1024   ;;  %p2076_p13 = pmov %p2075_p8 }
  0x62   : > { %p2077_p0 = pmov %p2075_p8 }
  0x63   : > { %1641 = vsyncadd (%p2076_p13), [#allocation6], 4294966272 }
  0x64   : > { %1643 = dma.done.wait (%p2077_p0), [#allocation9], 1024   ;;  %p2078_p12 = pmov %p2077_p0 }
  0x65   : > { %v1682_v0 = vmov 0.0   ;;  %vm1683_vm0 = vmmov 0   ;;  %v1423_v1 = vld [vmem:[#allocation7 + $0x38] sm:$0xff]   ;;  %v1424_v2 = vld [vmem:[#allocation7 + $0x30] sm:$0xff]   ;;  %v1425_v3 = vld [vmem:[#allocation7 + $0x28] sm:$0xff]   ;;  %vm413_vm1 = vcmask 261120  }
  0x66   : > { %1645 = vsyncadd (%p2078_p12), [#allocation9], 4294966272  ;;  %1236 = vmatprep.subr.bf16.mxu0 %v1682_v0  ;;  %1252 = vmatprep.mubr.msk.bf16.mxu0 %vm1683_vm0, %v1682_v0  ;;  %v1426_v4 = vld [vmem:[#allocation7 + $0x20] sm:$0xff]   ;;  %v1427_v5 = vld [vmem:[#allocation7 + $0x18] sm:$0xff]   ;;  %vm461_vm2 = vcmask 64512   ;;  %s1684_s21 = smov 96  }
  0x67   : > { %1256 = vmatprep.subr.bf16.mxu1 %v1682_v0  ;;  %1258 = vmatprep.mubr.msk.bf16.mxu1 %vm1683_vm0, %v1682_v0  ;;  %v1428_v6 = vld [vmem:[#allocation7 + $0x10] sm:$0xff]   ;;  %v1429_v7 = vld [vmem:[#allocation7 + $0x8] sm:$0xff]   ;;  %v1430_v8 = vld [vmem:[#allocation7] sm:$0xff]   ;;  %vm493_vm3 = vcmask 1043456   ;;  %s1685_s23 = smov 64   ;;  %s1686_s9 = smov 32  }
  0x68   : > { %1237 = vmatpush3.bf16.msra.mxu0 %v1423_v1  ;;  %v303_v9 = vld [vmem:[%s1857_s17] sm:$0xff]  ;;  %v304_v10 = vld [vmem:[%s1857_s17 + $0x8] sm:$0xff]  ;;  %vm894_vm4 = vcmask 523264   ;;  %vm897_vm5 = vcmask 785408   ;;  %s299_s10 = scalar_lea.vmem [#allocation10], %s1165_s3  ;;  %s1201_s29 = sshll.u32 %s1664_s18, 8 }
  0x69   : > { %1238 = vmatprep.subr.bf16.mxu0 %v1682_v0  ;;  %v305_v11 = vpack.c.bf16 %v304_v10, %v303_v9  ;;  %v306_v12 = vld [vmem:[%s1865_s30] sm:$0xf]  ;;  %s1024_s11 = sshll.u32 %s299_s10, 4  ;;  %s2003_s8 = scalar_lea.hbm %s2055_s4, %s1201_s29  ;;  %s1998_s11 = int_to_ptr.vmem [resolvable:$true] %s1024_s11 }
  0x6a   : > { %v1899_v13 = vsel %vm413_vm1, %v306_v12, 0  ;;  %v1179_v25 = vcombine.low %v306_v12, %v306_v12  ;;  %s1009_s14 = scalar_lea.sflag [#allocation4], %s1851_s0  ;;  %s1580_s26 = scalar_lea.vmem %s1998_s11, 256 }
  0x6b   : > { %1257 = vmatpush3.bf16.xpose.msra.mxu1 %v1899_v13  ;;  %p1581_p4 = scmp.ne.s32.totalorder %s1998_s11, %s1580_s26  ;;  %s1687_s18 = smov [#allocation10]  }
  0x6c   : > { %1239 = vmatpush3.bf16.msra.mxu0 %v1424_v2  ;;  %1262 = vmatprep.subr.bf16.mxu1 %v1682_v0  ;;  %s1584_s12 = sshll.u32 %s1687_s18, 4  ;;  %s1585_s12 = int_to_ptr.vmem [resolvable:$false] %s1584_s12 }
  0x6d   : > { %1240 = vmatprep.subr.bf16.mxu0 %v1682_v0  ;;  %p1582_p3 = pnand %p1581_p4, %p1806_p9  ;;  %s1586_s28 = scalar_lea.vmem %s1585_s12, 512 }
  0x6e   : > { %p1587_p11 = scmp.lt.s32.totalorder %s1998_s11, %s1585_s12  ;;  %p1588_p5 = scmp.lt.s32.totalorder %s1586_s28, %s1580_s26 }
  0x6f   : > { %p1583_p7 = pneg %p1582_p3 }
  0x70   : > { %1241 = vmatpush3.bf16.msra.mxu0 %v1425_v3  ;;  %p1589_p10 = por %p1588_p5, %p1587_p11 }
  0x71   : > { %1242 = vmatprep.subr.bf16.mxu0 %v1682_v0 }
  0x72   : > { %p1590_p1 = pnand %p1589_p10, %p1583_p7 }
  0x74   : > { %1243 = vmatpush3.bf16.msra.mxu0 %v1426_v4 }
  0x75   : > { %1244 = vmatprep.subr.bf16.mxu0 %v1682_v0 }
  0x78   : > { %1245 = vmatpush3.bf16.msra.mxu0 %v1427_v5 }
  0x79   : > { %1246 = vmatprep.subr.bf16.mxu0 %v1682_v0 }
  0x7c   : > { %1247 = vmatpush3.bf16.msra.mxu0 %v1428_v6 }
  0x7d   : > { %1248 = vmatprep.subr.bf16.mxu0 %v1682_v0 }
  0x80   : > { %1249 = vmatpush3.bf16.msra.mxu0 %v1429_v7 }
  0x81   : > { %1250 = vmatprep.subr.bf16.mxu0 %v1682_v0 }
  0x84   : > { %1251 = vmatpush3.bf16.msra.mxu0 %v1430_v8 }
  0x85   : > { %1304 = vmatprep.subr.bf16.mxu0 %v1682_v0 }
  0x87   : > { %1253 = vmatmul.mubr.bf16.vlgmr.msra.gmra.mxu0 %v305_v11 }
  0x88   : > { %1320 = vmatprep.mubr.msk.bf16.mxu0 %vm1683_vm0, %v1682_v0 }
 0x147   : > { %v405_v14 = vpop.f32.mrf.mxu0 }
 0x149   : > { %v1254_v15 = vpop.f32.mrf.mxu0 }
 0x14b   : > { %v408_v16 = vpop.f32.mrf.mxu0 }
 0x14c   : > { %v1903_v17 = vpack.c.bf16 %v408_v16, %v405_v14 }
 0x14d   : > { %v1255_v18 = vpop.f32.mrf.mxu0 }
 0x14e   : > { %1259 = vmatmul.mubr.msk.bf16.vlgmr.msra.gmra.mxu1 %vm413_vm1, %v1903_v17 }
 0x14f   : > { %1264 = vmatprep.mubr.msk.bf16.mxu1 %vm1683_vm0, %v1682_v0 }
 0x20e   : > { %v454_v19 = vpop.f32.mrf.mxu1 }
 0x20f   : > { %v462_v20 = vsel %vm461_vm2, %v454_v19, -inf }
 0x210   : > { %463 = vmax.xlane.f32.xlu0 %v462_v20  ;;  %v1260_v21 = vpop.f32.mrf.mxu1 }
 0x212   : > { %v457_v22 = vpop.f32.mrf.mxu1 }
 0x213   : > { %v465_v23 = vsel %vm461_vm2, %v457_v22, -inf }
 0x214   : > { %466 = vmax.xlane.f32.xlu0 %v465_v23  ;;  %v1261_v24 = vpop.f32.mrf.mxu1 }
 0x22a   : > { %488 = vrot.lane.b32.xlu0 %v1179_v25, %s1684_s21 }
 0x299   : > { %v464_v26 = vpop.xlane.xlu0 %463 }
 0x29a   : > { %v468_v27 = vsub.f32 %v454_v19, %v464_v26 }
 0x29c   : > { %v470_v28 = vmul.f32 1.442695, %v468_v27 }
 0x29d   : > { %v467_v29 = vpop.xlane.xlu0 %466 }
 0x29e   : > { %1440 = vpow2.f32 %v470_v28  ;;  %v469_v30 = vsub.f32 %v457_v22, %v467_v29 }
 0x2a0   : > { %v472_v31 = vmul.f32 1.442695, %v469_v30 }
 0x2a1   : > { %v489_v36 = vpop.permute.xlu0 %488 }
 0x2a2   : > { %1442 = vpow2.f32 %v472_v31  ;;  %v1914_v37 = vsel %vm493_vm3, %v489_v36, 0 }
 0x2a3   : > { %1263 = vmatpush3.bf16.msra.mxu1 %v1914_v37 }
 0x2a4   : > { %1268 = vmatprep.subr.bf16.mxu1 %v1682_v0 }
 0x2ab   : > { %v1441_v32 = vpop.eup %1440 }
 0x2ac   : > { %v474_v33 = vsel %vm461_vm2, %v1441_v32, 0.0 }
 0x2ad   : > { %475 = vadd.xlane.f32.xlu1 %v474_v33 }
 0x2af   : > { %v1443_v34 = vpop.eup %1442 }
 0x2b0   : > { %v477_v35 = vsel %vm461_vm2, %v1443_v34, 0.0 }
 0x2b1   : > { %478 = vadd.xlane.f32.xlu1 %v477_v35 }
 0x2c2   : > { %540 = vrot.lane.b32.xlu1 %v1903_v17, %s1684_s21 }
 0x336   : > { %v476_v38 = vpop.xlane.xlu1 %475 }
 0x337   : > { %1444 = vrcp.f32 %v476_v38 }
 0x33a   : > { %v479_v39 = vpop.xlane.xlu1 %478 }
 0x33b   : > { %1446 = vrcp.f32 %v479_v39 }
 0x33e   : > { %v541_v45 = vpop.permute.xlu1 %540 }
 0x344   : > { %v1445_v40 = vpop.eup %1444 }
 0x345   : > { %v482_v42 = vmul.f32 %v1445_v40, %v1441_v32 }
 0x348   : > { %v1447_v41 = vpop.eup %1446 }
 0x349   : > { %v483_v43 = vmul.f32 %v1447_v41, %v1443_v34 }
 0x34b   : > { %v484_v44 = vpack.c.bf16 %v483_v43, %v482_v42 }
 0x34d   : > { %1265 = vmatmul.mubr.msk.bf16.vlgmr.msra.gmra.mxu1 %vm461_vm2, %v484_v44 }
 0x34e   : > { %1269 = vmatpush3.bf16.xpose.msra.mxu1 %v1899_v13  ;;  %1270 = vmatprep.mubr.msk.bf16.mxu1 %vm1683_vm0, %v1682_v0 }
 0x34f   : > { %1274 = vmatprep.subr.bf16.mxu1 %v1682_v0 }
 0x355   : > { %1271 = vmatmul.mubr.msk.bf16.vlgmr.msra.gmra.mxu1 %vm413_vm1, %v541_v45 }
 0x356   : > { %1275 = vmatpush3.bf16.msra.mxu1 %v1914_v37  ;;  %1276 = vmatprep.mubr.msk.bf16.mxu1 %vm1683_vm0, %v1682_v0 }
 0x357   : > { %1280 = vmatprep.subr.bf16.mxu1 %v1682_v0 }
 0x40d   : > { %v1930_v46 = vpop.f32.mrf.mxu1 }
 0x40f   : > { %v1266_v47 = vpop.f32.mrf.mxu1 }
 0x411   : > { %v1932_v48 = vpop.f32.mrf.mxu1 }
 0x412   : > { %v538_v49 = vpack.c.bf16 %v1932_v48, %v1930_v46 }
 0x413   : > { %v1267_v50 = vpop.f32.mrf.mxu1 }
 0x415   : > { %v579_v51 = vpop.f32.mrf.mxu1 }
 0x416   : > { %v586_v52 = vsel %vm461_vm2, %v579_v51, -inf }
 0x417   : > { %587 = vmax.xlane.f32.xlu1 %v586_v52  ;;  %v1272_v53 = vpop.f32.mrf.mxu1 }
 0x419   : > { %v582_v54 = vpop.f32.mrf.mxu1 }
 0x41a   : > { %v589_v55 = vsel %vm461_vm2, %v582_v54, -inf }
 0x41b   : > { %590 = vmax.xlane.f32.xlu0 %v589_v55  ;;  %v1273_v56 = vpop.f32.mrf.mxu1 }
 0x4a0   : > { %v588_v57 = vpop.xlane.xlu1 %587 }
 0x4a1   : > { %v592_v58 = vsub.f32 %v579_v51, %v588_v57 }
 0x4a3   : > { %v594_v59 = vmul.f32 1.442695, %v592_v58 }
 0x4a4   : > { %v591_v60 = vpop.xlane.xlu0 %590 }
 0x4a5   : > { %1448 = vpow2.f32 %v594_v59  ;;  %v593_v61 = vsub.f32 %v582_v54, %v591_v60 }
 0x4a7   : > { %v596_v62 = vmul.f32 1.442695, %v593_v61 }
 0x4a9   : > { %1450 = vpow2.f32 %v596_v62 }
 0x4b2   : > { %v1449_v63 = vpop.eup %1448 }
 0x4b3   : > { %v598_v1 = vsel %vm461_vm2, %v1449_v63, 0.0 }
 0x4b4   : > { %599 = vadd.xlane.f32.xlu0 %v598_v1 }
 0x4b6   : > { %v1451_v2 = vpop.eup %1450 }
 0x4b7   : > { %v601_v3 = vsel %vm461_vm2, %v1451_v2, 0.0 }
 0x4b8   : > { %602 = vadd.xlane.f32.xlu1 %v601_v3 }
 0x4ca   : > { %654 = vrot.lane.b32.xlu0 %v1903_v17, %s1685_s23 }
 0x53d   : > { %v600_v4 = vpop.xlane.xlu0 %599 }
 0x53e   : > { %1452 = vrcp.f32 %v600_v4 }
 0x541   : > { %v603_v5 = vpop.xlane.xlu1 %602  ;;  %v655_v11 = vpop.permute.xlu0 %654 }
 0x542   : > { %1454 = vrcp.f32 %v603_v5 }
 0x54b   : > { %v1453_v6 = vpop.eup %1452 }
 0x54c   : > { %v606_v8 = vmul.f32 %v1453_v6, %v1449_v63 }
 0x54f   : > { %v1455_v7 = vpop.eup %1454 }
 0x550   : > { %v607_v9 = vmul.f32 %v1455_v7, %v1451_v2 }
 0x552   : > { %v608_v10 = vpack.c.bf16 %v607_v9, %v606_v8  ;;  %v1432_v9 = vld [vmem:[#allocation8 + $0x38] sm:$0xff]  }
 0x553   : > { %1305 = vmatpush3.bf16.msra.mxu0 %v1432_v9 }
 0x554   : > { %1277 = vmatmul.mubr.msk.bf16.vlgmr.msra.gmra.mxu1 %vm461_vm2, %v608_v10  ;;  %v1433_v10 = vld [vmem:[#allocation8 + $0x30] sm:$0xff]   ;;  %1306 = vmatprep.subr.bf16.mxu0 %v1682_v0 }
 0x555   : > { %1281 = vmatpush3.bf16.xpose.msra.mxu1 %v1899_v13  ;;  %1282 = vmatprep.mubr.msk.bf16.mxu1 %vm1683_vm0, %v1682_v0 }
 0x556   : > { %1286 = vmatprep.subr.bf16.mxu1 %v1682_v0 }
 0x557   : > { %1307 = vmatpush3.bf16.msra.mxu0 %v1433_v10 }
 0x558   : > { %1308 = vmatprep.subr.bf16.mxu0 %v1682_v0 }
 0x55c   : > { %1283 = vmatmul.mubr.msk.bf16.vlgmr.msra.gmra.mxu1 %vm413_vm1, %v655_v11  ;;  %v1434_v11 = vld [vmem:[#allocation8 + $0x28] sm:$0xff]  }
 0x55d   : > { %1287 = vmatpush3.bf16.msra.mxu1 %v1914_v37  ;;  %1288 = vmatprep.mubr.msk.bf16.mxu1 %vm1683_vm0, %v1682_v0 }
 0x55e   : > { %1292 = vmatprep.subr.bf16.mxu1 %v1682_v0  ;;  %1309 = vmatpush3.bf16.msra.mxu0 %v1434_v11 }
 0x55f   : > { %1310 = vmatprep.subr.bf16.mxu0 %v1682_v0 }
 0x614   : > { %v1952_v12 = vpop.f32.mrf.mxu1 }
 0x616   : > { %v1278_v14 = vpop.f32.mrf.mxu1 }
 0x617   : > { %v1436_v14 = vld [vmem:[#allocation8 + $0x18] sm:$0xff]  }
 0x618   : > { %v1954_v15 = vpop.f32.mrf.mxu1 }
 0x619   : > { %v653_v16 = vpack.c.bf16 %v1954_v15, %v1952_v12  ;;  %v1435_v12 = vld [vmem:[#allocation8 + $0x20] sm:$0xff]   ;;  %v1437_v15 = vld [vmem:[#allocation8 + $0x10] sm:$0xff]  }
 0x61a   : > { %v1279_v18 = vpop.f32.mrf.mxu1  ;;  %1311 = vmatpush3.bf16.msra.mxu0 %v1435_v12 }
 0x61b   : > { %1312 = vmatprep.subr.bf16.mxu0 %v1682_v0  ;;  %v1439_v18 = vld [vmem:[#allocation8] sm:$0xff]  }
 0x61c   : > { %v693_v19 = vpop.f32.mrf.mxu1 }
 0x61d   : > { %v700_v20 = vsel %vm461_vm2, %v693_v19, -inf }
 0x61e   : > { %701 = vmax.xlane.f32.xlu1 %v700_v20  ;;  %v1284_v21 = vpop.f32.mrf.mxu1  ;;  %1313 = vmatpush3.bf16.msra.mxu0 %v1436_v14 }
 0x61f   : > { %1314 = vmatprep.subr.bf16.mxu0 %v1682_v0 }
 0x620   : > { %v696_v22 = vpop.f32.mrf.mxu1 }
 0x621   : > { %v703_v23 = vsel %vm461_vm2, %v696_v22, -inf }
 0x622   : > { %704 = vmax.xlane.f32.xlu1 %v703_v23  ;;  %v1285_v24 = vpop.f32.mrf.mxu1  ;;  %1315 = vmatpush3.bf16.msra.mxu0 %v1437_v15 }
 0x623   : > { %1316 = vmatprep.subr.bf16.mxu0 %v1682_v0 }
 0x6a7   : > { %v702_v25 = vpop.xlane.xlu1 %701 }
 0x6a8   : > { %v706_v26 = vsub.f32 %v693_v19, %v702_v25 }
 0x6aa   : > { %v708_v27 = vmul.f32 1.442695, %v706_v26 }
 0x6ab   : > { %v705_v28 = vpop.xlane.xlu1 %704 }
 0x6ac   : > { %1456 = vpow2.f32 %v708_v27  ;;  %v707_v29 = vsub.f32 %v696_v22, %v705_v28 }
 0x6ae   : > { %v710_v30 = vmul.f32 1.442695, %v707_v29 }
 0x6b0   : > { %1458 = vpow2.f32 %v710_v30 }
 0x6b9   : > { %v1457_v31 = vpop.eup %1456 }
 0x6ba   : > { %v712_v32 = vsel %vm461_vm2, %v1457_v31, 0.0 }
 0x6bb   : > { %713 = vadd.xlane.f32.xlu1 %v712_v32 }
 0x6bd   : > { %v1459_v33 = vpop.eup %1458 }
 0x6be   : > { %v715_v34 = vsel %vm461_vm2, %v1459_v33, 0.0 }
 0x6bf   : > { %716 = vadd.xlane.f32.xlu1 %v715_v34 }
 0x6d0   : > { %768 = vrot.lane.b32.xlu1 %v1903_v17, %s1686_s9 }
 0x744   : > { %v714_v35 = vpop.xlane.xlu1 %713 }
 0x745   : > { %1460 = vrcp.f32 %v714_v35 }
 0x748   : > { %v717_v36 = vpop.xlane.xlu1 %716 }
 0x749   : > { %1462 = vrcp.f32 %v717_v36 }
 0x74c   : > { %v769_v43 = vpop.permute.xlu1 %768 }
 0x752   : > { %v1461_v38 = vpop.eup %1460 }
 0x753   : > { %v720_v40 = vmul.f32 %v1461_v38, %v1457_v31 }
 0x756   : > { %v1463_v39 = vpop.eup %1462 }
 0x757   : > { %v721_v41 = vmul.f32 %v1463_v39, %v1459_v33 }
 0x759   : > { %v722_v42 = vpack.c.bf16 %v721_v41, %v720_v40 }
 0x75b   : > { %1289 = vmatmul.mubr.msk.bf16.vlgmr.msra.gmra.mxu1 %vm461_vm2, %v722_v42 }
 0x75c   : > { %1293 = vmatpush3.bf16.xpose.msra.mxu1 %v1899_v13  ;;  %1294 = vmatprep.mubr.msk.bf16.mxu1 %vm1683_vm0, %v1682_v0 }
 0x75d   : > { %1298 = vmatprep.subr.bf16.mxu1 %v1682_v0 }
 0x763   : > { %1295 = vmatmul.mubr.msk.bf16.vlgmr.msra.gmra.mxu1 %vm413_vm1, %v769_v43 }
 0x764   : > { %1299 = vmatpush3.bf16.msra.mxu1 %v1914_v37  ;;  %1300 = vmatprep.mubr.msk.bf16.mxu1 %vm1683_vm0, %v1682_v0 }
 0x81b   : > { %v760_v17 = vpop.f32.mrf.mxu1 }
 0x81d   : > { %v1290_v44 = vpop.f32.mrf.mxu1 }
 0x81f   : > { %v763_v45 = vpop.f32.mrf.mxu1 }
 0x820   : > { %v767_v55 = vpack.c.bf16 %v763_v45, %v760_v17 }
 0x821   : > { %v1291_v47 = vpop.f32.mrf.mxu1 }
 0x823   : > { %v807_v50 = vpop.f32.mrf.mxu1 }
 0x824   : > { %v814_v13 = vsel %vm461_vm2, %v807_v50, -inf }
 0x825   : > { %815 = vmax.xlane.f32.xlu0 %v814_v13  ;;  %v1296_v51 = vpop.f32.mrf.mxu1 }
 0x827   : > { %v810_v52 = vpop.f32.mrf.mxu1 }
 0x828   : > { %v817_v53 = vsel %vm461_vm2, %v810_v52, -inf }
 0x829   : > { %818 = vmax.xlane.f32.xlu1 %v817_v53  ;;  %v1297_v54 = vpop.f32.mrf.mxu1 }
 0x83a   : > { %886 = vrot.lane.b32.xlu1 %v767_v55, %s1685_s23 }
 0x8ae   : > { %v816_v37 = vpop.xlane.xlu0 %815 }
 0x8af   : > { %v820_v56 = vsub.f32 %v807_v50, %v816_v37 }
 0x8b1   : > { %v822_v57 = vmul.f32 1.442695, %v820_v56 }
 0x8b2   : > { %v819_v58 = vpop.xlane.xlu1 %818 }
 0x8b3   : > { %1464 = vpow2.f32 %v822_v57  ;;  %v821_v59 = vsub.f32 %v810_v52, %v819_v58 }
 0x8b5   : > { %v824_v60 = vmul.f32 1.442695, %v821_v59 }
 0x8b6   : > { %v887_v26 = vpop.permute.xlu1 %886 }
 0x8b7   : > { %1466 = vpow2.f32 %v824_v60 }
 0x8c0   : > { %v1465_v61 = vpop.eup %1464 }
 0x8c1   : > { %v826_v62 = vsel %vm461_vm2, %v1465_v61, 0.0 }
 0x8c2   : > { %827 = vadd.xlane.f32.xlu0 %v826_v62 }
 0x8c4   : > { %v1467_v63 = vpop.eup %1466 }
 0x8c5   : > { %v829_v1 = vsel %vm461_vm2, %v1467_v63, 0.0 }
 0x8c6   : > { %830 = vadd.xlane.f32.xlu0 %v829_v1 }
 0x8dc   : > { %883 = vrot.lane.b32.xlu0 %v653_v16, %s1686_s9  ;;  %v1438_v16 = vld [vmem:[#allocation8 + $0x8] sm:$0xff]  }
 0x8dd   : > { %1317 = vmatpush3.bf16.msra.mxu0 %v1438_v16 }
 0x8de   : > { %1318 = vmatprep.subr.bf16.mxu0 %v1682_v0 }
 0x8e1   : > { %1319 = vmatpush3.bf16.msra.mxu0 %v1439_v18 }
 0x94b   : > { %v828_v2 = vpop.xlane.xlu0 %827 }
 0x94c   : > { %1468 = vrcp.f32 %v828_v2 }
 0x94f   : > { %v831_v3 = vpop.xlane.xlu0 %830 }
 0x950   : > { %1470 = vrcp.f32 %v831_v3 }
 0x953   : > { %v884_v24 = vpop.permute.xlu0 %883 }
 0x954   : > { %v893_v25 = vsel %vm413_vm1, %v538_v49, %v884_v24 }
 0x955   : > { %v896_v0 = vsel %vm894_vm4, %v893_v25, %v887_v26 }
 0x959   : > { %v1469_v4 = vpop.eup %1468 }
 0x95a   : > { %v834_v6 = vmul.f32 %v1469_v4, %v1465_v61 }
 0x95d   : > { %v1471_v5 = vpop.eup %1470 }
 0x95e   : > { %v835_v7 = vmul.f32 %v1471_v5, %v1467_v63 }
 0x960   : > { %v836_v8 = vpack.c.bf16 %v835_v7, %v834_v6 }
 0x962   : > { %1301 = vmatmul.mubr.msk.bf16.vlgmr.msra.gmra.mxu1 %vm461_vm2, %v836_v8 }
 0xa22   : > { %v874_v19 = vpop.f32.mrf.mxu1 }
 0xa24   : > { %v1302_v20 = vpop.f32.mrf.mxu1 }
 0xa26   : > { %v877_v21 = vpop.f32.mrf.mxu1 }
 0xa27   : > { %v881_v22 = vpack.c.bf16 %v877_v21, %v874_v19 }
 0xa28   : > { %v1303_v23 = vpop.f32.mrf.mxu1 }
 0xa29   : > { %889 = vrot.lane.b32.xlu0 %v881_v22, %s1684_s21 }
 0xa9b   : > { %v890_v27 = vpop.permute.xlu0 %889 }
 0xa9c   : > { %v899_v28 = vsel %vm897_vm5, %v896_v0, %v890_v27 }
 0xa9d   : > { %1321 = vmatmul.mubr.bf16.vlgmr.msra.gmra.mxu0 %v899_v28 }
 0xb5d   : > { %v999_v29 = vpop.f32.mrf.mxu0 }
 0xb5e   : > { %1006 = vst [vmem:[%s299_s10] sm:$0xff] %v999_v29 }
 0xb5f   : > { %v1322_v46 = vpop.f32.mrf.mxu0 }
 0xb61   : > { %v1002_v48 = vpop.f32.mrf.mxu0 }
 0xb62   : > { %1007 = vst [vmem:[%s299_s10 + $0x8] sm:$0xff] %v1002_v48 }
 0xb63   : > { %v1323_v49 = vpop.f32.mrf.mxu0 }
 0xb64   : > { %1593 = shalt.err (!%p1590_p1)
}
 0xb65   : > { %s1594_s7 = scalar_lea.hbm %s2003_s8, 256  ;;  %s1598_s17 = scalar_lea.hbm %s2055_s4, 512 }
 0xb66   : > { %p1595_p2 = scmp.ne.s32.totalorder %s2003_s8, %s1594_s7  ;;  %p1599_p13 = scmp.lt.s32.totalorder %s2003_s8, %s2055_s4 }
 0xb67   : > { %p1600_p0 = scmp.lt.s32.totalorder %s1598_s17, %s1594_s7 }
 0xb68   : > { %p1596_p6 = pnand %p1595_p2, %p1806_p9 }
 0xb69   : > { %p1601_p12 = por %p1600_p0, %p1599_p13 }
 0xb6a   : > { %p1597_p8 = pneg %p1596_p6 }
 0xb6c   : > { %p1602_p4 = pnand %p1601_p12, %p1597_p8 }
 0xb6e   : > { %1605 = shalt.err (!%p1602_p4)
}
 0xb6f   : > { %s1688_s13 = smov 128   ;;  %s1689_s30 = smov 8  }
 0xb70   : > { %1336 = dma.vmem_to_hbm [thread:$0]  (%p1806_p9), %s1998_s11, 256, %s2003_s8, %s1009_s14, %s1688_s13, %s1688_s13, %s1689_s30  }
 0xb71 PF: > { %s1039_s21 = sand.u32 1, %s1652_s15   ;;  %p2079_p3 = scmp.ne.s32.totalorder %s2064_s24, 0 }
 0xb72   : > { %p2080_p7 = scmp.ge.s32.totalorder %s1672_s20, 2  ;;  %s1040_s23 = scalar_lea.sflag [#allocation4], %s1039_s21 }
 0xb74   : > { %p1353_p11 = pnand %p2080_p7, %p2079_p3 }
 0xb76   : > { %p1354_p5 = pneg %p1353_p11 }
 0xb78   : > { %1647 = dma.done.wait (%p1354_p5), %s1040_s23, 256  }
 0xb79   : > { %1649 = vsyncadd (%p1354_p5), %s1040_s23, 4294967040  ;;  %s24_s20 = sadd.s32 1, %s1672_s20   ;;  %s2081_s9 = sld [smem:[#allocation16_spill]] }
 0xb7a   : > { %p21_p10 = scmp.ge.s32.totalorder %s24_s20, 4   ;;  %s2082_s17 = sld [smem:[#allocation18_spill]] }
 0xb7b   : > { %s2083_s22 = sld [smem:[#allocation17_spill]]  ;;  %s2084_s15 = smov %s1656_s16 }
 0xb7c   : > { %s2086_s18 = smov %s1668_s19 }
 0xb7d   :  { %23 = sbr.rel (!%p21_p10) target bundleno = 13 (0xd), region = 102 }
 0xb7f   : > { %s2085_s16 = smov %s2081_s9 }
 0xb81   : > { %s2087_s19 = smov %s2083_s22 }
 0xb82   :  { %1045 = vsyncpa [#allocation3], 1 }
 0xb83   :  { %1047 = vsyncpa [#allocation3 + $0x1], 1 }
 0xb84   :  { %1048 = vsyncpa [#allocation6], 1 }
 0xb85   :  { %1050 = vsyncpa [#allocation6 + $0x1], 1 }
 0xb86   :  { %1051 = vsyncpa [#allocation9], 1 }
 0xb87   :  { %1052 = vsyncpa [#allocation4], 1 }
 0xb88   :  { %1054 = vsyncpa [#allocation4 + $0x1], 1 }

</bundles_post_ra>
